<compile_context>
chip_gen: v5e
topology: v5e:2x2
jax: 0.10.0
libtpu: 0.0.40
codegen_flags: <defaults>
</compile_context>

<pallas_src>
import jax
import jax.numpy as jnp
from jax.experimental import pallas as pl
from jax.experimental.pallas import tpu as pltpu


# --------------------------------------------------------------------------- #
# Kernel A: fused Q/K/V(+ones) projection
# --------------------------------------------------------------------------- #
def _make_proj_kernel(emb_dim):
    def kernel(emb_ref, w_ref, q_ref, kv_ref):
        full = jnp.dot(emb_ref[...], w_ref[...],
                       preferred_element_type=jnp.float32)
        q_ref[...] = full[:, :emb_dim]
        kv_ref[...] = full[:, emb_dim:]
    return kernel


def _fuse_weights(w_q, w_k, w_v, head_num):
    """Build W_big (D+1, 2D + H*(Dh+1)) so that [emb | 1] @ W_big = [q | k | vaug].

    Column layout: [ q (D) | k (D) | head0: v_0 (Dh), 1 | head1: v_1 (Dh), 1 | ... ]
    The per-head ones column turns the attention denominator into an extra
    output column of the numerator matmul in Kernel B.
    """
    d = w_q.shape[0]
    dh = d // head_num
    a = dh + 1
    p = 2 * d + head_num * a
    w = jnp.zeros((d + 1, p), jnp.float32)
    w = w.at[:d, :d].set(w_q.astype(jnp.float32))
    w = w.at[:d, d:2 * d].set(w_k.astype(jnp.float32))
    for h in range(head_num):
        base = 2 * d + h * a
        w = w.at[:d, base:base + dh].set(
            w_v[:, h * dh:(h + 1) * dh].astype(jnp.float32))
        w = w.at[d, base + dh].set(1.0)   # ones column -> attention denominator
    return w


# --------------------------------------------------------------------------- #
# Kernel B: tiled masked multi-head attention with fused denominator
# --------------------------------------------------------------------------- #
def _make_attn_kernel(head_num, head_dim):
    d = head_num * head_dim
    a = head_dim + 1   # per-head [v | 1] width

    def kernel(adj_ref, q_ref, kv_ref, out_ref, acc_ref):
        j = pl.program_id(1)

        @pl.when(j == 0)
        def _():
            acc_ref[...] = jnp.zeros_like(acc_ref)

        mask = adj_ref[...].astype(jnp.float32)      # (TM, TN) 0/1 (bf16 exact)
        q = q_ref[...]                               # (TM, D)
        kv = kv_ref[...]                             # (TN, D + H*(Dh+1))
        k = kv[:, :d]
        vaug = kv[:, d:]

        # Static loop over heads: each head is a (TM,Dh)x(Dh,TN) score matmul
        # plus one (TM,TN)x(TN,Dh+1) matmul that yields numerator AND
        # denominator (appended ones column) in a single MXU pass.
        for h in range(head_num):
            q_h = q[:, h * head_dim:(h + 1) * head_dim]
            k_h = k[:, h * head_dim:(h + 1) * head_dim]
            s_h = jax.lax.dot_general(
                q_h, k_h, (((1,), (1,)), ((), ())),
                preferred_element_type=jnp.float32)          # (TM, TN)
            e_h = jnp.exp(jnp.clip(s_h, -10.0, 10.0)) * mask
            v_h = vaug[:, h * a:(h + 1) * a]                 # (TN, Dh+1)
            acc_ref[:, h * a:(h + 1) * a] += jnp.dot(
                e_h, v_h, preferred_element_type=jnp.float32)

        @pl.when(j == pl.num_programs(1) - 1)
        def _():
            acc = acc_ref[...]
            outs = []
            for h in range(head_num):
                num = acc[:, h * a:h * a + head_dim]          # (TM, Dh)
                den = acc[:, h * a + head_dim:(h + 1) * a]    # (TM, 1)
                inv = pl.reciprocal(den + 1e-8, approx=True)  # EUP, not VPU div
                outs.append(num * inv)
            # Single lane-dense store of the whole (TM, D) tile (avoids H
            # narrow masked partial stores).
            out_ref[...] = jnp.concatenate(outs, axis=1).astype(out_ref.dtype)

    return kernel


# --------------------------------------------------------------------------- #
# Wrapper
# --------------------------------------------------------------------------- #
def _tile(n, pref):
    t = min(pref, n)
    while t > 8 and n % t != 0:
        t //= 2
    return t if (n % t == 0) else n


def gt_layer_forward(adj_dense, embeds, w_q, w_k, w_v, head_num,
                     tm=256, tn=256):
    """Dense-adjacency equivalent of GTLayer.forward.

    adj_dense : (N, N) 0/1 adjacency (the reference ignores edge values too).
    embeds    : (N, D) node embeddings.
    w_q/k/v   : (D, D) projection weights.
    Returns   : (N, D) attended embeddings.
    """
    n, d = embeds.shape
    assert d % head_num == 0
    dh = d // head_num
    a = dh + 1
    dkv = d + head_num * a           # k + per-head [v | 1]
    ptot = d + dkv

    embeds = embeds.astype(jnp.float32)
    adj_bf16 = adj_dense.astype(jnp.bfloat16)   # 0/1 exact in bf16, half the bytes

    # ----- Kernel A: fused projection ------------------------------------- #
    emb_aug = jnp.concatenate(
        [embeds, jnp.ones((n, 1), jnp.float32)], axis=1)      # (N, D+1)
    w_big = _fuse_weights(w_q, w_k, w_v, head_num)            # (D+1, Ptot)

    tm_p = _tile(n, 256)
    q, kv = pl.pallas_call(
        _make_proj_kernel(d),
        out_shape=(jax.ShapeDtypeStruct((n, d), jnp.float32),
                   jax.ShapeDtypeStruct((n, dkv), jnp.float32)),
        grid_spec=pltpu.PrefetchScalarGridSpec(
            num_scalar_prefetch=0,
            grid=(n // tm_p,),
            in_specs=[pl.BlockSpec((tm_p, d + 1), lambda i: (i, 0)),
                      pl.BlockSpec((d + 1, ptot), lambda i: (0, 0))],
            out_specs=[pl.BlockSpec((tm_p, d), lambda i: (i, 0)),
                       pl.BlockSpec((tm_p, dkv), lambda i: (i, 0))]),
        compiler_params=pltpu.CompilerParams(
            dimension_semantics=("parallel",)),
    )(emb_aug, w_big)

    # ----- Kernel B: tiled masked multi-head attention --------------------- #
    # Row axis "parallel" (megacore-shardable), reduction (column) axis last
    # and "arbitrary" (accumulator resident in VMEM scratch).  For large N,
    # raise tn toward 1024-2048 (bf16 adj tiles ~0.5-1 MiB/buffer) to stay near
    # the HBM roofline while fitting the default scoped-VMEM limit.
    tm = _tile(n, tm)
    tn = _tile(n, tn)

    res = pl.pallas_call(
        _make_attn_kernel(head_num, dh),
        out_shape=jax.ShapeDtypeStruct((n, d), jnp.float32),
        grid_spec=pltpu.PrefetchScalarGridSpec(
            num_scalar_prefetch=0,
            grid=(n // tm, n // tn),
            in_specs=[pl.BlockSpec((tm, tn), lambda i, j: (i, j)),
                      pl.BlockSpec((tm, d), lambda i, j: (i, 0)),
                      pl.BlockSpec((tn, dkv), lambda i, j: (j, 0))],
            out_specs=pl.BlockSpec((tm, d), lambda i, j: (i, 0)),
            scratch_shapes=[pltpu.VMEM((tm, head_num * a), jnp.float32)]),
        compiler_params=pltpu.CompilerParams(
            dimension_semantics=("parallel", "arbitrary")),
        cost_estimate=pl.CostEstimate(
            flops=2 * n * n * (2 * d + head_num),
            transcendentals=n * n * head_num,
            bytes_accessed=n * n * 2 + 4 * n * (d + dkv + d)),
    )(adj_bf16, q, kv)

    return res


# --------------------------------------------------------------------------- #
# Pure-JAX reference (dense form of the PyTorch edge-list computation)
# --------------------------------------------------------------------------- #
def gt_layer_reference(adj, embeds, w_q, w_k, w_v, head_num):
    n, d = embeds.shape
    dh = d // head_num
    qh = (embeds @ w_q).reshape(n, head_num, dh)
    kh = (embeds @ w_k).reshape(n, head_num, dh)
    vh = (embeds @ w_v).reshape(n, head_num, dh)
    scores = jnp.einsum('ihd,jhd->hij', qh, kh)
    e = jnp.exp(jnp.clip(scores, -10.0, 10.0)) * adj[None, :, :]
    den = e.sum(axis=2) + 1e-8                         # (H, N)
    num = jnp.einsum('hij,jhd->ihd', e, vh)            # (N, H, Dh)
    out = num / den.T[:, :, None]
    return out.reshape(n, d)


# --------------------------------------------------------------------------- #
# Demo
# --------------------------------------------------------------------------- #
if __name__ == "__main__":
    key = jax.random.PRNGKey(0)
    k_adj, k_emb, k_q, k_k, k_v = jax.random.split(key, 5)

    # configs['model']: embedding_size=32, head_num=4; small node count.
    N, D, H = 512, 32, 4

    # Deterministic synthetic binary adjacency with self loops (sparse COO in
    # the reference, densified here).
    adj = (jax.random.uniform(k_adj, (N, N)) < 0.05).astype(jnp.float32)
    adj = jnp.maximum(adj, jnp.eye(N, dtype=jnp.float32))

    embeds = jax.random.normal(k_emb, (N, D), dtype=jnp.float32)

    # xavier_uniform_ equivalent: U(-b, b), b = sqrt(6 / (fan_in + fan_out)).
    bound = (6.0 / (D + D)) ** 0.5
    w_q = jax.random.uniform(k_q, (D, D), minval=-bound, maxval=bound,
                             dtype=jnp.float32)
    w_k = jax.random.uniform(k_k, (D, D), minval=-bound, maxval=bound,
                             dtype=jnp.float32)
    w_v = jax.random.uniform(k_v, (D, D), minval=-bound, maxval=bound,
                             dtype=jnp.float32)

    res = gt_layer_forward(adj, embeds, w_q, w_k, w_v, head_num=H)
    jax.block_until_ready(res)
    assert res.shape == (N, D)
    assert bool(jnp.all(jnp.isfinite(res)))

    ref = gt_layer_reference(adj, embeds, w_q, w_k, w_v, head_num=H)
    err = float(jnp.max(jnp.abs(res - ref)) / (jnp.max(jnp.abs(ref)) + 1e-6))
    assert err < 1e-2, f"max relative error {err}"
    print("KERNEL_OK")
</pallas_src>

<mosaic_0001>
module attributes {stable_mosaic.version = 11 : i64} {
  func.func @kernel(%arg0: i32, %arg1: memref<256x33xf32, #tpu.memory_space<vmem>>, %arg2: memref<33x100xf32, #tpu.memory_space<vmem>>, %arg3: memref<256x32xf32, #tpu.memory_space<vmem>>, %arg4: memref<256x68xf32, #tpu.memory_space<vmem>>) attributes {dimension_semantics = [#tpu.dimension_semantics<parallel>], iteration_bounds = array<i64: 2>, scalar_prefetch = 0 : i64, scratch_operands = 0 : i64, tpu.core_type = #tpu.core_type<tc>, window_params = [{transform_indices = @transform_0, window_bounds = array<i64: 256, 33>}, {pipeline_mode = #tpu.pipeline_mode<synchronous>, transform_indices = @transform_1, window_bounds = array<i64: 33, 100>}, {transform_indices = @transform_2, window_bounds = array<i64: 256, 32>}, {transform_indices = @transform_3, window_bounds = array<i64: 256, 68>}]} {
    %c0 = arith.constant 0 : index
    %c0_0 = arith.constant 0 : index
    %0 = vector.load %arg1[%c0, %c0_0] : memref<256x33xf32, #tpu.memory_space<vmem>>, vector<256x33xf32>
    %c0_1 = arith.constant 0 : index
    %c0_2 = arith.constant 0 : index
    %1 = vector.load %arg2[%c0_1, %c0_2] : memref<33x100xf32, #tpu.memory_space<vmem>>, vector<33x100xf32>
    %cst = arith.constant dense<0.000000e+00> : vector<256x100xf32>
    %2 = tpu.matmul %0, %1, %cst {dimension_numbers = #tpu.dot_dimension_numbers<[1], [0], [0], [1], [0, 0, 1, 1], [], []>} : vector<256x33xf32>, vector<33x100xf32>, vector<256x100xf32> -> vector<256x100xf32>
    %3 = vector.extract_strided_slice %2 {offsets = [0, 0], sizes = [256, 32], strides = [1, 1]} : vector<256x100xf32> to vector<256x32xf32>
    %c0_3 = arith.constant 0 : index
    %c0_4 = arith.constant 0 : index
    %4 = vector.load %arg3[%c0_3, %c0_4] : memref<256x32xf32, #tpu.memory_space<vmem>>, vector<256x32xf32>
    tpu.vector_store %arg3[%c0_3, %c0_4], %3 {strides = array<i32>} : memref<256x32xf32, #tpu.memory_space<vmem>>, vector<256x32xf32>,
    %5 = vector.extract_strided_slice %2 {offsets = [0, 32], sizes = [256, 68], strides = [1, 1]} : vector<256x100xf32> to vector<256x68xf32>
    %c0_5 = arith.constant 0 : index
    %c0_6 = arith.constant 0 : index
    %6 = vector.load %arg4[%c0_5, %c0_6] : memref<256x68xf32, #tpu.memory_space<vmem>>, vector<256x68xf32>
    tpu.vector_store %arg4[%c0_5, %c0_6], %5 {strides = array<i32>} : memref<256x68xf32, #tpu.memory_space<vmem>>, vector<256x68xf32>,
    return
  }
  func.func @transform_0(%arg0: i32) -> (i32, i32) {
    %c0_i32 = arith.constant 0 : i32
    %c0_i32_0 = arith.constant 0 : i32
    return %arg0, %c0_i32 : i32, i32
  }
  func.func @transform_1(%arg0: i32) -> (i32, i32) {
    %c0_i32 = arith.constant 0 : i32
    %c0_i32_0 = arith.constant 0 : i32
    %c0_i32_1 = arith.constant 0 : i32
    return %c0_i32, %c0_i32_0 : i32, i32
  }
  func.func @transform_2(%arg0: i32) -> (i32, i32) {
    %c0_i32 = arith.constant 0 : i32
    %c0_i32_0 = arith.constant 0 : i32
    return %arg0, %c0_i32 : i32, i32
  }
  func.func @transform_3(%arg0: i32) -> (i32, i32) {
    %c0_i32 = arith.constant 0 : i32
    %c0_i32_0 = arith.constant 0 : i32
    return %arg0, %c0_i32 : i32, i32
  }
}

</mosaic_0001>

<bundles_post_ra>
// kernel: tpu_custom_call.1
= control target key start
LH: loop header
LB: loop body
LE: loop exit
PB: predicated region body
PF: predicated region fallthrough
CT: control target
= control target key end

     0   :  { %s822_s12 = smov 0   ;;  %s1092_s0 = inlined_call_operand.vmem [shape: f32[512,33], index: 0, kind: input, shape index: {}]   ;;  %s1093_s1 = inlined_call_operand.vmem [shape: f32[33,100], index: 1, kind: input, shape index: {}]   ;;  %s1094_s2 = inlined_call_operand.vmem [shape: f32[512,32], index: 2, kind: output, shape index: {0}]   ;;  %s1095_s3 = inlined_call_operand.vmem [shape: f32[512,68], index: 3, kind: output, shape index: {1}]  }
   0x1 LB: > { %s723_s13 = sadd.s32 4294967295, %s799_s12   ;;  %p727_p0 = scmp.ge.s32.totalorder %s799_s12, 1  ;;  %s799_s12 = sphi %s822_s12, %s14_s12  }
   0x2   : > { %p141_p1 = scmp.lt.s32.totalorder %s799_s12, 3 }
   0x4   : > { %p142_p2 = pnand %p727_p0, %p141_p1 }
   0x5   : > { %s728_s18 = sshll.u32 (!%p142_p2), %s723_s13, 5  ;;  %s801_s5 = smov (!%p142_p2), 96  }
   0x6   : > { %145 = sbr.rel (%p142_p2) target bundleno = 350 (0x15e), region = 28  ;;  %p171_p3 = scmp.lt.s32.totalorder (!%p142_p2), %s728_s18, 63 }
   0xb   : > { %v224_v0 = vld [vmem:[%s1093_s1 + $0x20] sm:$0x1]  ;;  %vm322_vm0 = vcmask 1040384   ;;  %v223_v1 = vld [vmem:[%s1093_s1 + $0x18] sm:$0xff]  ;;  %v222_v2 = vld [vmem:[%s1093_s1 + $0x10] sm:$0xff]  ;;  %s1097_s18 = smov (!%p171_p3, %s728_s18), 63 }
   0xc   : > { %734 = vmatpush.msk.msra.mxu0 %vm322_vm0, %v224_v0  ;;  %770 = vmatpush.msk.msra.mxu2 %vm322_vm0, %v224_v0  ;;  %v221_v3 = vld [vmem:[%s1093_s1 + $0x8] sm:$0xff]  ;;  %s842_s23 = sshll.u32 %s1097_s18, 3  ;;  %v220_v4 = vld [vmem:[%s1093_s1] sm:$0xff]  ;;  %vm225_vm1 = vcmask 269312   ;;  %vm439_vm2 = vcmask 261120   ;;  %vm600_vm3 = vcmask 556032  }
   0xd   : > { %771 = vmatpush.msk.msra.mxu3 %vm322_vm0, %v224_v0  ;;  %769 = vmatpush.msk.msra.mxu1 %vm322_vm0, %v224_v0  ;;  %s851_s28 = scalar_lea.vmem %s1092_s0, %s842_s23  ;;  %s921_s4 = scalar_lea.vmem %s1094_s2, %s842_s23 }
   0xe   : > { %338 = vmatpush.msra.mxu0 %v223_v1  ;;  %773 = vmatpush.msra.mxu2 %v223_v1  ;;  %v188_v5 = vld [vmem:[%s851_s28] sm:$0xff]  ;;  %v189_v9 = vld [vmem:[%s851_s28 + $0x8] sm:$0xff]  ;;  %v190_v13 = vld [vmem:[%s851_s28 + $0x10] sm:$0xff]  ;;  %s1023_s8 = scalar_lea.vmem %s1095_s3, %s842_s23 }
   0xf   : > { %774 = vmatpush.msra.mxu3 %v223_v1  ;;  %772 = vmatpush.msra.mxu1 %v223_v1  ;;  %v204_v6 = vld [vmem:[%s851_s28 + $0x80] sm:$0xff]  ;;  %v205_v10 = vld [vmem:[%s851_s28 + $0x88] sm:$0xff]  ;;  %v214_v14 = vld [vmem:[%s851_s28 + $0xd0] sm:$0xff] }
  0x10   : > { %339 = vmatpush.msra.mxu0 %v222_v2  ;;  %776 = vmatpush.msra.mxu2 %v222_v2  ;;  %v212_v7 = vld [vmem:[%s851_s28 + $0xc0] sm:$0xff]  ;;  %v213_v11 = vld [vmem:[%s851_s28 + $0xc8] sm:$0xff]  ;;  %v206_v15 = vld [vmem:[%s851_s28 + $0x90] sm:$0xff] }
  0x11   : > { %777 = vmatpush.msra.mxu3 %v222_v2  ;;  %775 = vmatpush.msra.mxu1 %v222_v2  ;;  %v196_v8 = vld [vmem:[%s851_s28 + $0x40] sm:$0xff]  ;;  %v197_v12 = vld [vmem:[%s851_s28 + $0x48] sm:$0xff]  ;;  %v198_v16 = vld [vmem:[%s851_s28 + $0x50] sm:$0xff] }
  0x12   : > { %340 = vmatpush.msra.mxu0 %v221_v3  ;;  %779 = vmatpush.msra.mxu2 %v221_v3  ;;  %v191_v17 = vld [vmem:[%s851_s28 + $0x18] sm:$0xff]  ;;  %v192_v21 = vld [vmem:[%s851_s28 + $0x20] sm:$0xff]  ;;  %v193_v25 = vld [vmem:[%s851_s28 + $0x28] sm:$0xff] }
  0x13   : > { %780 = vmatpush.msra.mxu3 %v221_v3  ;;  %778 = vmatpush.msra.mxu1 %v221_v3  ;;  %v207_v18 = vld [vmem:[%s851_s28 + $0x98] sm:$0xff]  ;;  %v208_v22 = vld [vmem:[%s851_s28 + $0xa0] sm:$0xff]  ;;  %v209_v26 = vld [vmem:[%s851_s28 + $0xa8] sm:$0xff] }
  0x14   : > { %341 = vmatpush.msra.mxu0 %v220_v4  ;;  %782 = vmatpush.msra.mxu2 %v220_v4  ;;  %v215_v19 = vld [vmem:[%s851_s28 + $0xd8] sm:$0xff]  ;;  %v216_v23 = vld [vmem:[%s851_s28 + $0xe0] sm:$0xff]  ;;  %v217_v27 = vld [vmem:[%s851_s28 + $0xe8] sm:$0xff] }
  0x15   : > { %783 = vmatpush.msra.mxu3 %v220_v4  ;;  %735 = vmatmul.msk.f32.vlgmr.msra.gmra.mxu0 %vm225_vm1, %v188_v5  ;;  %v199_v20 = vld [vmem:[%s851_s28 + $0x58] sm:$0xff]  ;;  %v200_v24 = vld [vmem:[%s851_s28 + $0x60] sm:$0xff]  ;;  %v201_v28 = vld [vmem:[%s851_s28 + $0x68] sm:$0xff] }
  0x16   : > { %751 = vmatmul.msk.f32.vlgmr.msra.gmra.mxu2 %vm225_vm1, %v204_v6  ;;  %759 = vmatmul.msk.f32.vlgmr.msra.gmra.mxu3 %vm225_vm1, %v212_v7  ;;  %v194_v29 = vld [vmem:[%s851_s28 + $0x30] sm:$0xff]  ;;  %v195_v33 = vld [vmem:[%s851_s28 + $0x38] sm:$0xff] }
  0x17   : > { %781 = vmatpush.msra.mxu1 %v220_v4  ;;  %v210_v30 = vld [vmem:[%s851_s28 + $0xb0] sm:$0xff]  ;;  %v211_v34 = vld [vmem:[%s851_s28 + $0xb8] sm:$0xff] }
  0x18   : > { %743 = vmatmul.msk.f32.vlgmr.msra.gmra.mxu1 %vm225_vm1, %v196_v8  ;;  %v218_v31 = vld [vmem:[%s851_s28 + $0xf0] sm:$0xff]  ;;  %v219_v35 = vld [vmem:[%s851_s28 + $0xf8] sm:$0xff] }
  0x19   : > { %v202_v32 = vld [vmem:[%s851_s28 + $0x70] sm:$0xff]  ;;  %v203_v36 = vld [vmem:[%s851_s28 + $0x78] sm:$0xff] }
  0x1d   : > { %736 = vmatmul.msk.f32.gmra.mxu0 %vm225_vm1, %v189_v9 }
  0x1e   : > { %752 = vmatmul.msk.f32.gmra.mxu2 %vm225_vm1, %v205_v10  ;;  %760 = vmatmul.msk.f32.gmra.mxu3 %vm225_vm1, %v213_v11 }
  0x20   : > { %744 = vmatmul.msk.f32.gmra.mxu1 %vm225_vm1, %v197_v12 }
  0x25   : > { %737 = vmatmul.msk.f32.gmra.mxu0 %vm225_vm1, %v190_v13 }
  0x26   : > { %761 = vmatmul.msk.f32.gmra.mxu3 %vm225_vm1, %v214_v14  ;;  %753 = vmatmul.msk.f32.gmra.mxu2 %vm225_vm1, %v206_v15 }
  0x28   : > { %745 = vmatmul.msk.f32.gmra.mxu1 %vm225_vm1, %v198_v16 }
  0x2d   : > { %738 = vmatmul.msk.f32.gmra.mxu0 %vm225_vm1, %v191_v17 }
  0x2e   : > { %754 = vmatmul.msk.f32.gmra.mxu2 %vm225_vm1, %v207_v18  ;;  %762 = vmatmul.msk.f32.gmra.mxu3 %vm225_vm1, %v215_v19 }
  0x30   : > { %746 = vmatmul.msk.f32.gmra.mxu1 %vm225_vm1, %v199_v20 }
  0x35   : > { %739 = vmatmul.msk.f32.gmra.mxu0 %vm225_vm1, %v192_v21 }
  0x36   : > { %755 = vmatmul.msk.f32.gmra.mxu2 %vm225_vm1, %v208_v22  ;;  %763 = vmatmul.msk.f32.gmra.mxu3 %vm225_vm1, %v216_v23 }
  0x38   : > { %747 = vmatmul.msk.f32.gmra.mxu1 %vm225_vm1, %v200_v24 }
  0x3d   : > { %740 = vmatmul.msk.f32.gmra.mxu0 %vm225_vm1, %v193_v25 }
  0x3e   : > { %756 = vmatmul.msk.f32.gmra.mxu2 %vm225_vm1, %v209_v26  ;;  %764 = vmatmul.msk.f32.gmra.mxu3 %vm225_vm1, %v217_v27 }
  0x40   : > { %748 = vmatmul.msk.f32.gmra.mxu1 %vm225_vm1, %v201_v28 }
  0x45   : > { %741 = vmatmul.msk.f32.gmra.mxu0 %vm225_vm1, %v194_v29 }
  0x46   : > { %757 = vmatmul.msk.f32.gmra.mxu2 %vm225_vm1, %v210_v30  ;;  %765 = vmatmul.msk.f32.gmra.mxu3 %vm225_vm1, %v218_v31 }
  0x48   : > { %749 = vmatmul.msk.f32.gmra.mxu1 %vm225_vm1, %v202_v32 }
  0x4d   : > { %742 = vmatmul.msk.f32.gmra.mxu0 %vm225_vm1, %v195_v33 }
  0x4e   : > { %758 = vmatmul.msk.f32.gmra.mxu2 %vm225_vm1, %v211_v34  ;;  %766 = vmatmul.msk.f32.gmra.mxu3 %vm225_vm1, %v219_v35 }
  0x50   : > { %750 = vmatmul.msk.f32.gmra.mxu1 %vm225_vm1, %v203_v36 }
  0x92   : > { %v343_v37 = vpop.f32.mrf.mxu0 }
  0x93   : > { %440 = vst.msk [vmem:[%s921_s4] sm:$0xff] %vm439_vm2, %v343_v37  ;;  %504 = vrot.lane.b32.xlu0 %v343_v37, %s801_s5 }
  0x95   : > { %v367_v38 = vpop.f32.mrf.mxu1 }
  0x96   : > { %448 = vst.msk [vmem:[%s921_s4 + $0x40] sm:$0xff] %vm439_vm2, %v367_v38  ;;  %520 = vrot.lane.b32.xlu2 %v367_v38, %s801_s5 }
  0x99   : > { %v391_v39 = vpop.f32.mrf.mxu2  ;;  %v415_v40 = vpop.f32.mrf.mxu3 }
  0x9a   : > { %456 = vst.msk [vmem:[%s921_s4 + $0x80] sm:$0xff] %vm439_vm2, %v391_v39  ;;  %536 = vrot.lane.b32.xlu1 %v391_v39, %s801_s5  ;;  %v346_v41 = vpop.f32.mrf.mxu0 }
  0x9b   : > { %464 = vst.msk [vmem:[%s921_s4 + $0xc0] sm:$0xff] %vm439_vm2, %v415_v40  ;;  %552 = vrot.lane.b32.xlu0 %v415_v40, %s801_s5 }
  0x9c   : > { %441 = vst.msk [vmem:[%s921_s4 + $0x8] sm:$0xff] %vm439_vm2, %v346_v41 }
  0x9d   : > { %v370_v42 = vpop.f32.mrf.mxu1 }
  0x9e   : > { %449 = vst.msk [vmem:[%s921_s4 + $0x48] sm:$0xff] %vm439_vm2, %v370_v42 }
  0xa1   : > { %v394_v43 = vpop.f32.mrf.mxu2  ;;  %v418_v44 = vpop.f32.mrf.mxu3 }
  0xa2   : > { %457 = vst.msk [vmem:[%s921_s4 + $0x88] sm:$0xff] %vm439_vm2, %v394_v43  ;;  %554 = vrot.lane.b32.xlu1 %v418_v44, %s801_s5  ;;  %538 = vrot.lane.b32.xlu2 %v394_v43, %s801_s5  ;;  %v349_v45 = vpop.f32.mrf.mxu0 }
  0xa3   : > { %465 = vst.msk [vmem:[%s921_s4 + $0xc8] sm:$0xff] %vm439_vm2, %v418_v44  ;;  %506 = vrot.lane.b32.xlu0 %v346_v41, %s801_s5 }
  0xa4   : > { %442 = vst.msk [vmem:[%s921_s4 + $0x10] sm:$0xff] %vm439_vm2, %v349_v45 }
  0xa5   : > { %v373_v46 = vpop.f32.mrf.mxu1 }
  0xa6   : > { %450 = vst.msk [vmem:[%s921_s4 + $0x50] sm:$0xff] %vm439_vm2, %v373_v46 }
  0xa9   : > { %v421_v47 = vpop.f32.mrf.mxu3  ;;  %v397_v48 = vpop.f32.mrf.mxu2 }
  0xaa   : > { %466 = vst.msk [vmem:[%s921_s4 + $0xd0] sm:$0xff] %vm439_vm2, %v421_v47  ;;  %556 = vrot.lane.b32.xlu2 %v421_v47, %s801_s5  ;;  %508 = vrot.lane.b32.xlu1 %v349_v45, %s801_s5  ;;  %v352_v49 = vpop.f32.mrf.mxu0 }
  0xab   : > { %522 = vrot.lane.b32.xlu0 %v370_v42, %s801_s5  ;;  %443 = vst.msk [vmem:[%s921_s4 + $0x18] sm:$0xff] %vm439_vm2, %v352_v49 }
  0xac   : > { %458 = vst.msk [vmem:[%s921_s4 + $0x90] sm:$0xff] %vm439_vm2, %v397_v48 }
  0xad   : > { %v376_v50 = vpop.f32.mrf.mxu1 }
  0xae   : > { %451 = vst.msk [vmem:[%s921_s4 + $0x58] sm:$0xff] %vm439_vm2, %v376_v50 }
  0xb1   : > { %v400_v51 = vpop.f32.mrf.mxu2  ;;  %v424_v52 = vpop.f32.mrf.mxu3 }
  0xb2   : > { %526 = vrot.lane.b32.xlu2 %v376_v50, %s801_s5  ;;  %524 = vrot.lane.b32.xlu1 %v373_v46, %s801_s5  ;;  %v355_v53 = vpop.f32.mrf.mxu0  ;;  %459 = vst.msk [vmem:[%s921_s4 + $0x98] sm:$0xff] %vm439_vm2, %v400_v51 }
  0xb3   : > { %540 = vrot.lane.b32.xlu0 %v397_v48, %s801_s5  ;;  %444 = vst.msk [vmem:[%s921_s4 + $0x20] sm:$0xff] %vm439_vm2, %v355_v53 }
  0xb4   : > { %467 = vst.msk [vmem:[%s921_s4 + $0xd8] sm:$0xff] %vm439_vm2, %v424_v52 }
  0xb5   : > { %v379_v54 = vpop.f32.mrf.mxu1 }
  0xb6   : > { %452 = vst.msk [vmem:[%s921_s4 + $0x60] sm:$0xff] %vm439_vm2, %v379_v54 }
  0xb9   : > { %v403_v55 = vpop.f32.mrf.mxu2  ;;  %v427_v56 = vpop.f32.mrf.mxu3 }
  0xba   : > { %510 = vrot.lane.b32.xlu1 %v352_v49, %s801_s5  ;;  %512 = vrot.lane.b32.xlu2 %v355_v53, %s801_s5  ;;  %460 = vst.msk [vmem:[%s921_s4 + $0xa0] sm:$0xff] %vm439_vm2, %v403_v55  ;;  %v358_v57 = vpop.f32.mrf.mxu0 }
  0xbb   : > { %558 = vrot.lane.b32.xlu0 %v424_v52, %s801_s5  ;;  %445 = vst.msk [vmem:[%s921_s4 + $0x28] sm:$0xff] %vm439_vm2, %v358_v57 }
  0xbc   : > { %468 = vst.msk [vmem:[%s921_s4 + $0xe0] sm:$0xff] %vm439_vm2, %v427_v56 }
  0xbd   : > { %v382_v58 = vpop.f32.mrf.mxu1 }
  0xbe   : > { %453 = vst.msk [vmem:[%s921_s4 + $0x68] sm:$0xff] %vm439_vm2, %v382_v58 }
  0xc1   : > { %v406_v59 = vpop.f32.mrf.mxu2  ;;  %v430_v60 = vpop.f32.mrf.mxu3 }
  0xc2   : > { %542 = vrot.lane.b32.xlu1 %v400_v51, %s801_s5  ;;  %544 = vrot.lane.b32.xlu2 %v403_v55, %s801_s5  ;;  %461 = vst.msk [vmem:[%s921_s4 + $0xa8] sm:$0xff] %vm439_vm2, %v406_v59  ;;  %v361_v61 = vpop.f32.mrf.mxu0 }
  0xc3   : > { %528 = vrot.lane.b32.xlu0 %v379_v54, %s801_s5  ;;  %446 = vst.msk [vmem:[%s921_s4 + $0x30] sm:$0xff] %vm439_vm2, %v361_v61 }
  0xc4   : > { %469 = vst.msk [vmem:[%s921_s4 + $0xe8] sm:$0xff] %vm439_vm2, %v430_v60 }
  0xc5   : > { %v385_v62 = vpop.f32.mrf.mxu1 }
  0xc6   : > { %454 = vst.msk [vmem:[%s921_s4 + $0x70] sm:$0xff] %vm439_vm2, %v385_v62 }
  0xc9   : > { %v409_v63 = vpop.f32.mrf.mxu2  ;;  %v433_v0 = vpop.f32.mrf.mxu3 }
  0xca   : > { %560 = vrot.lane.b32.xlu1 %v427_v56, %s801_s5  ;;  %514 = vrot.lane.b32.xlu2 %v358_v57, %s801_s5  ;;  %462 = vst.msk [vmem:[%s921_s4 + $0xb0] sm:$0xff] %vm439_vm2, %v409_v63  ;;  %v364_v1 = vpop.f32.mrf.mxu0 }
  0xcb   : > { %546 = vrot.lane.b32.xlu0 %v406_v59, %s801_s5  ;;  %447 = vst.msk [vmem:[%s921_s4 + $0x38] sm:$0xff] %vm439_vm2, %v364_v1 }
  0xcc   : > { %470 = vst.msk [vmem:[%s921_s4 + $0xf0] sm:$0xff] %vm439_vm2, %v433_v0 }
  0xcd   : > { %v388_v2 = vpop.f32.mrf.mxu1 }
  0xce   : > { %455 = vst.msk [vmem:[%s921_s4 + $0x78] sm:$0xff] %vm439_vm2, %v388_v2 }
  0xd1   : > { %v412_v3 = vpop.f32.mrf.mxu2  ;;  %v436_v4 = vpop.f32.mrf.mxu3 }
  0xd2   : > { %530 = vrot.lane.b32.xlu1 %v382_v58, %s801_s5  ;;  %532 = vrot.lane.b32.xlu2 %v385_v62, %s801_s5  ;;  %463 = vst.msk [vmem:[%s921_s4 + $0xb8] sm:$0xff] %vm439_vm2, %v412_v3 }
  0xd3   : > { %516 = vrot.lane.b32.xlu0 %v361_v61, %s801_s5  ;;  %471 = vst.msk [vmem:[%s921_s4 + $0xf8] sm:$0xff] %vm439_vm2, %v436_v4 }
  0xda   : > { %548 = vrot.lane.b32.xlu1 %v409_v63, %s801_s5  ;;  %550 = vrot.lane.b32.xlu2 %v412_v3, %s801_s5 }
  0xdb   : > { %534 = vrot.lane.b32.xlu0 %v388_v2, %s801_s5 }
  0xe2   : > { %562 = vrot.lane.b32.xlu2 %v430_v60, %s801_s5  ;;  %518 = vrot.lane.b32.xlu1 %v364_v1, %s801_s5 }
  0xe3   : > { %564 = vrot.lane.b32.xlu0 %v433_v0, %s801_s5 }
  0xea   : > { %566 = vrot.lane.b32.xlu1 %v436_v4, %s801_s5 }
  0xf0   : > { %v521_v5 = vpop.permute.xlu2 %520 }
  0xf1   : > { %609 = vst.msk [vmem:[%s1023_s8 + $0x40] sm:$0xff] %vm600_vm3, %v521_v5 }
  0xfc   : > { %v539_v6 = vpop.permute.xlu2 %538 }
  0xfd   : > { %618 = vst.msk [vmem:[%s1023_s8 + $0x88] sm:$0xff] %vm600_vm3, %v539_v6 }
 0x104   : > { %v557_v7 = vpop.permute.xlu2 %556 }
 0x105   : > { %627 = vst.msk [vmem:[%s1023_s8 + $0xd0] sm:$0xff] %vm600_vm3, %v557_v7  ;;  %v505_v8 = vpop.permute.xlu0 %504 }
 0x106   : > { %601 = vst.msk [vmem:[%s1023_s8] sm:$0xff] %vm600_vm3, %v505_v8 }
 0x10c   : > { %v537_v9 = vpop.permute.xlu1 %536  ;;  %v527_v10 = vpop.permute.xlu2 %526 }
 0x10d   : > { %617 = vst.msk [vmem:[%s1023_s8 + $0x80] sm:$0xff] %vm600_vm3, %v537_v9  ;;  %v553_v11 = vpop.permute.xlu0 %552 }
 0x10e   : > { %612 = vst.msk [vmem:[%s1023_s8 + $0x58] sm:$0xff] %vm600_vm3, %v527_v10 }
 0x10f   : > { %625 = vst.msk [vmem:[%s1023_s8 + $0xc0] sm:$0xff] %vm600_vm3, %v553_v11 }
 0x114   : > { %v555_v12 = vpop.permute.xlu1 %554  ;;  %v513_v13 = vpop.permute.xlu2 %512 }
 0x115   : > { %626 = vst.msk [vmem:[%s1023_s8 + $0xc8] sm:$0xff] %vm600_vm3, %v555_v12  ;;  %v507_v14 = vpop.permute.xlu0 %506 }
 0x116   : > { %605 = vst.msk [vmem:[%s1023_s8 + $0x20] sm:$0xff] %vm600_vm3, %v513_v13 }
 0x117   : > { %602 = vst.msk [vmem:[%s1023_s8 + $0x8] sm:$0xff] %vm600_vm3, %v507_v14 }
 0x11c   : > { %v509_v15 = vpop.permute.xlu1 %508  ;;  %v545_v16 = vpop.permute.xlu2 %544 }
 0x11d   : > { %603 = vst.msk [vmem:[%s1023_s8 + $0x10] sm:$0xff] %vm600_vm3, %v509_v15  ;;  %v523_v17 = vpop.permute.xlu0 %522 }
 0x11e   : > { %621 = vst.msk [vmem:[%s1023_s8 + $0xa0] sm:$0xff] %vm600_vm3, %v545_v16 }
 0x11f   : > { %610 = vst.msk [vmem:[%s1023_s8 + $0x48] sm:$0xff] %vm600_vm3, %v523_v17 }
 0x124   : > { %v525_v18 = vpop.permute.xlu1 %524  ;;  %v515_v19 = vpop.permute.xlu2 %514 }
 0x125   : > { %611 = vst.msk [vmem:[%s1023_s8 + $0x50] sm:$0xff] %vm600_vm3, %v525_v18  ;;  %v541_v20 = vpop.permute.xlu0 %540 }
 0x126   : > { %606 = vst.msk [vmem:[%s1023_s8 + $0x28] sm:$0xff] %vm600_vm3, %v515_v19 }
 0x127   : > { %619 = vst.msk [vmem:[%s1023_s8 + $0x90] sm:$0xff] %vm600_vm3, %v541_v20 }
 0x12c   : > { %v511_v21 = vpop.permute.xlu1 %510  ;;  %v533_v22 = vpop.permute.xlu2 %532 }
 0x12d   : > { %604 = vst.msk [vmem:[%s1023_s8 + $0x18] sm:$0xff] %vm600_vm3, %v511_v21  ;;  %v559_v23 = vpop.permute.xlu0 %558 }
 0x12e   : > { %615 = vst.msk [vmem:[%s1023_s8 + $0x70] sm:$0xff] %vm600_vm3, %v533_v22 }
 0x12f   : > { %628 = vst.msk [vmem:[%s1023_s8 + $0xd8] sm:$0xff] %vm600_vm3, %v559_v23 }
 0x134   : > { %v543_v24 = vpop.permute.xlu1 %542  ;;  %v551_v25 = vpop.permute.xlu2 %550 }
 0x135   : > { %620 = vst.msk [vmem:[%s1023_s8 + $0x98] sm:$0xff] %vm600_vm3, %v543_v24  ;;  %v529_v26 = vpop.permute.xlu0 %528 }
 0x136   : > { %624 = vst.msk [vmem:[%s1023_s8 + $0xb8] sm:$0xff] %vm600_vm3, %v551_v25 }
 0x137   : > { %613 = vst.msk [vmem:[%s1023_s8 + $0x60] sm:$0xff] %vm600_vm3, %v529_v26 }
 0x13c   : > { %v561_v27 = vpop.permute.xlu1 %560  ;;  %v563_v28 = vpop.permute.xlu2 %562 }
 0x13d   : > { %629 = vst.msk [vmem:[%s1023_s8 + $0xe0] sm:$0xff] %vm600_vm3, %v561_v27  ;;  %v547_v29 = vpop.permute.xlu0 %546 }
 0x13e   : > { %630 = vst.msk [vmem:[%s1023_s8 + $0xe8] sm:$0xff] %vm600_vm3, %v563_v28 }
 0x13f   : > { %622 = vst.msk [vmem:[%s1023_s8 + $0xa8] sm:$0xff] %vm600_vm3, %v547_v29 }
 0x144   : > { %v531_v30 = vpop.permute.xlu1 %530 }
 0x145   : > { %614 = vst.msk [vmem:[%s1023_s8 + $0x68] sm:$0xff] %vm600_vm3, %v531_v30  ;;  %v517_v31 = vpop.permute.xlu0 %516 }
 0x146   : > { %607 = vst.msk [vmem:[%s1023_s8 + $0x30] sm:$0xff] %vm600_vm3, %v517_v31 }
 0x14c   : > { %v549_v32 = vpop.permute.xlu1 %548 }
 0x14d   : > { %623 = vst.msk [vmem:[%s1023_s8 + $0xb0] sm:$0xff] %vm600_vm3, %v549_v32  ;;  %v535_v33 = vpop.permute.xlu0 %534 }
 0x14e   : > { %616 = vst.msk [vmem:[%s1023_s8 + $0x78] sm:$0xff] %vm600_vm3, %v535_v33 }
 0x154   : > { %v519_v34 = vpop.permute.xlu1 %518 }
 0x155   : > { %608 = vst.msk [vmem:[%s1023_s8 + $0x38] sm:$0xff] %vm600_vm3, %v519_v34  ;;  %v565_v35 = vpop.permute.xlu0 %564 }
 0x156   : > { %631 = vst.msk [vmem:[%s1023_s8 + $0xf0] sm:$0xff] %vm600_vm3, %v565_v35 }
 0x15c   : > { %v567_v36 = vpop.permute.xlu1 %566 }
 0x15d   : > { %632 = vst.msk [vmem:[%s1023_s8 + $0xf8] sm:$0xff] %vm600_vm3, %v567_v36 }
 0x15e PF: > { %s14_s12 = sadd.s32 1, %s799_s12  }
 0x15f   : > { %p11_p4 = scmp.ge.s32.totalorder %s14_s12, 4  }
 0x161   :  { %13 = sbr.rel (!%p11_p4) target bundleno = 1 (0x1), region = 70 }

</bundles_post_ra>
